<compile_context>
chip_gen: v7x
topology: tpu7x:2x2x1
jax: 0.10.0
libtpu: 0.0.40
codegen_flags: <defaults>
</compile_context>

<pallas_src>
import functools

import jax
import jax.numpy as jnp
import numpy as np
from jax.experimental import pallas as pl
from jax.experimental.pallas import tpu as pltpu


def _cdiv(a, b):
    return (a + b - 1) // b


# ---------------------------------------------------------------------------
# Packed kernel: score block (C, S_BLK, 128), labels block (S_BLK, 128).
# Used whenever HW % 128 == 0 (free reshape).  Full sublane packing even for
# small C; per-step partials are (C, 128) lane vectors in VMEM scratch.
# ---------------------------------------------------------------------------
def _dice_sums_packed_kernel(score_ref, labels_ref, out_ref,
                             acc_i, acc_z, acc_y, *,
                             n_rows, do_softmax, ragged):
    C, s_blk, _ = score_ref.shape
    j = pl.program_id(2)

    @pl.when(j == 0)
    def _():
        acc_i[...] = jnp.zeros_like(acc_i)
        acc_z[...] = jnp.zeros_like(acc_z)
        acc_y[...] = jnp.zeros_like(acc_y)

    lab = labels_ref[...].astype(jnp.int32)                  # (s_blk, 128)

    if ragged:
        # Global 128-pixel-row index of this block (p * num_j + j).
        gblock = pl.program_id(1) * pl.num_programs(2) + j
        row = (jax.lax.broadcasted_iota(jnp.int32, (s_blk, 128), 0)
               + gblock * s_blk)
        valid = row < n_rows
        lab = jnp.where(valid, lab, -1)                      # onehot == 0 on pad rows

    # Per-class (s_blk, 128) slabs, elementwise in the native dtype
    # (bf16 stays bf16 on v6e/v7x; every reduction below accumulates in f32).
    sc = [score_ref[c] for c in range(C)]

    if do_softmax:
        m = sc[0]
        for c in range(1, C):
            m = jnp.maximum(m, sc[c])
        es = [jnp.exp(x - m) for x in sc]
        denom = es[0]
        for c in range(1, C):
            denom = denom + es[c]
        inv = 1.0 / denom                                    # exact divide
        sc = [e * inv for e in es]

    if ragged:
        # Single NaN-safe select per class on the padded rows (after softmax).
        sc = [jnp.where(valid, x, 0.0) for x in sc]

    ints, sqs, ys = [], [], []
    for c in range(C):
        x = sc[c]
        ohb = lab == c
        oh = ohb.astype(x.dtype)
        ints.append(jnp.sum((x * oh).astype(jnp.float32), axis=0, keepdims=True))
        sqs.append(jnp.sum((x * x).astype(jnp.float32), axis=0, keepdims=True))
        ys.append(jnp.sum(ohb.astype(jnp.float32), axis=0, keepdims=True))

    acc_i[...] += jnp.concatenate(ints, axis=0)              # (C, 128)
    acc_z[...] += jnp.concatenate(sqs, axis=0)
    acc_y[...] += jnp.concatenate(ys, axis=0)

    @pl.when(j == pl.num_programs(2) - 1)
    def _():
        ti = jnp.sum(acc_i[...], axis=1, keepdims=True)      # (C, 1)
        tz = jnp.sum(acc_z[...], axis=1, keepdims=True)
        ty = jnp.sum(acc_y[...], axis=1, keepdims=True)
        out_ref[...] = jnp.concatenate([ti, tz, ty], axis=1)  # (C, 3)


# ---------------------------------------------------------------------------
# Flat fallback kernel: score block (C, t_hw), labels block (1, t_hw).
# Used only when HW % 128 != 0 (keeps the native layout, no pad/transpose).
# ---------------------------------------------------------------------------
def _dice_sums_flat_kernel(score_ref, labels_ref, out_ref,
                           acc_i, acc_z, acc_y, *,
                           hw, do_softmax, ragged):
    C, t_hw = score_ref.shape
    j = pl.program_id(1)

    @pl.when(j == 0)
    def _():
        acc_i[...] = jnp.zeros_like(acc_i)
        acc_z[...] = jnp.zeros_like(acc_z)
        acc_y[...] = jnp.zeros_like(acc_y)

    s = score_ref[...]                                       # (C, t_hw)
    lab = labels_ref[...].astype(jnp.int32)                  # (1, t_hw)

    if ragged:
        col = jax.lax.broadcasted_iota(jnp.int32, (1, t_hw), 1) + j * t_hw
        valid = col < hw
        lab = jnp.where(valid, lab, -1)

    if do_softmax:
        m = jnp.max(s, axis=0, keepdims=True)
        e = jnp.exp(s - m)
        denom = jnp.sum(e, axis=0, keepdims=True)
        s = e * (1.0 / denom)                                # exact divide

    if ragged:
        s = jnp.where(valid, s, 0.0)                         # NaN-safe select

    cls = jax.lax.broadcasted_iota(jnp.int32, (C, 1), 0)
    ohb = lab == cls                                         # (C, t_hw)
    oh = ohb.astype(s.dtype)

    acc_i[...] += jnp.sum((s * oh).astype(jnp.float32), axis=1, keepdims=True)
    acc_z[...] += jnp.sum((s * s).astype(jnp.float32), axis=1, keepdims=True)
    acc_y[...] += jnp.sum(ohb.astype(jnp.float32), axis=1, keepdims=True)

    @pl.when(j == pl.num_programs(1) - 1)
    def _():
        out_ref[...] = jnp.concatenate(
            [acc_i[...], acc_z[...], acc_y[...]], axis=1)    # (C, 3)


def dice_loss(inputs, target, n_classes, weight=None, softmax=False,
              block_rows=None, block_cols=None):
    """Pallas implementation of DiceLoss.forward.

    inputs: (N, C, H, W) float logits/probabilities (float32 or bfloat16).
    target: (N, H, W) integer class labels in [0, n_classes).
    block_rows / block_cols: optional tiling overrides (testing / tuning).
    """
    N, C, H, W = inputs.shape
    assert C == n_classes, f"predict C={C} & n_classes={n_classes} do not match"
    HW = H * W

    if inputs.dtype == jnp.bfloat16:
        pass                                   # bf16-native elementwise path
    elif inputs.dtype != jnp.float32:
        inputs = inputs.astype(jnp.float32)
    if not jnp.issubdtype(target.dtype, jnp.integer):
        target = target.astype(jnp.int32)
    itemsize = inputs.dtype.itemsize
    lab_itemsize = target.dtype.itemsize

    # Generation-aware VMEM sizing (v7x: 64 MiB/TC, v5e/v6e: 128 MiB).
    try:
        vmem_cap = int(pltpu.get_tpu_info().vmem_capacity_bytes)
    except Exception:
        vmem_cap = 64 * 1024 * 1024
    # A few MiB of score bytes per block: DMA time per step dwarfs the
    # ~0.35 us fixed overhead while leaving room for double-buffered inputs
    # and the elementwise temporaries (softmax / onehot).
    score_block_budget = min(max(vmem_cap // 16, 2 << 20), 8 << 20)
    vmem_limit = int(min(vmem_cap * 3 // 4, 96 << 20))

    softmax = bool(softmax)

    if HW % 128 == 0:
        # ------------------ sublane-packed path ------------------
        S = HW // 128
        score = inputs.reshape(N, C, S, 128)        # free reshape, no copy
        labels = target.reshape(N, S, 128)

        align = 8 if (itemsize == 4 and lab_itemsize == 4) else 32
        row_bytes = C * 128 * itemsize
        s_blk = max(align, (score_block_budget // row_bytes) // align * align)
        if block_rows is not None:
            s_blk = max(align, (int(block_rows) // align) * align)
        if s_blk >= S:
            s_blk = S                               # single full-extent block
        jb = _cdiv(S, s_blk)
        ragged = (S % s_blk) != 0

        # Megacore occupancy (v7x, 2 TCs): if the batch axis cannot feed two
        # cores, split the row-block axis into P parallel super-blocks.
        P = 2 if (N == 1 and jb >= 2 and jb % 2 == 0) else 1
        j_per = jb // P

        kernel = functools.partial(_dice_sums_packed_kernel, n_rows=S,
                                   do_softmax=softmax, ragged=ragged)
        partial_sums = pl.pallas_call(
            kernel,
            out_shape=jax.ShapeDtypeStruct((N * P, C, 3), jnp.float32),
            grid_spec=pltpu.PrefetchScalarGridSpec(
                num_scalar_prefetch=0,
                grid=(N, P, j_per),
                in_specs=[
                    pl.BlockSpec((None, C, s_blk, 128),
                                 lambda n, p, j: (n, 0, p * j_per + j, 0)),
                    pl.BlockSpec((None, s_blk, 128),
                                 lambda n, p, j: (n, p * j_per + j, 0)),
                ],
                out_specs=pl.BlockSpec((None, C, 3),
                                       lambda n, p, j: (n * P + p, 0, 0)),
                scratch_shapes=[pltpu.VMEM((C, 128), jnp.float32),
                                pltpu.VMEM((C, 128), jnp.float32),
                                pltpu.VMEM((C, 128), jnp.float32)],
            ),
            compiler_params=pltpu.CompilerParams(
                dimension_semantics=("parallel", "parallel", "arbitrary"),
                vmem_limit_bytes=vmem_limit),
        )(score, labels)
    else:
        # ------------------ flat fallback path (HW % 128 != 0) ------------------
        score = inputs.reshape(N, C, HW)            # free reshape, no copy
        labels = target.reshape(N, 1, HW)

        hw_pad = _cdiv(HW, 128) * 128
        t_hw = (score_block_budget // (C * itemsize)) // 128 * 128
        if block_cols is not None:
            t_hw = (int(block_cols) // 128) * 128
        t_hw = max(128, min(t_hw, hw_pad))
        jb = _cdiv(HW, t_hw)
        ragged = (HW % t_hw) != 0

        kernel = functools.partial(_dice_sums_flat_kernel, hw=HW,
                                   do_softmax=softmax, ragged=ragged)
        partial_sums = pl.pallas_call(
            kernel,
            out_shape=jax.ShapeDtypeStruct((N, C, 3), jnp.float32),
            grid_spec=pltpu.PrefetchScalarGridSpec(
                num_scalar_prefetch=0,
                grid=(N, jb),
                in_specs=[
                    pl.BlockSpec((None, C, t_hw), lambda n, j: (n, 0, j)),
                    pl.BlockSpec((None, 1, t_hw), lambda n, j: (n, 0, j)),
                ],
                out_specs=pl.BlockSpec((None, C, 3), lambda n, j: (n, 0, 0)),
                scratch_shapes=[pltpu.VMEM((C, 1), jnp.float32),
                                pltpu.VMEM((C, 1), jnp.float32),
                                pltpu.VMEM((C, 1), jnp.float32)],
            ),
            compiler_params=pltpu.CompilerParams(
                dimension_semantics=("parallel", "arbitrary"),
                vmem_limit_bytes=vmem_limit),
        )(score, labels)

    # Tiny per-class scalar combine stays in plain JAX.
    sums = jnp.sum(partial_sums, axis=0)                     # (C, 3)
    smooth = 1e-5
    intersect, z_sum, y_sum = sums[:, 0], sums[:, 1], sums[:, 2]
    dice = 1.0 - (2.0 * intersect + smooth) / (z_sum + y_sum + smooth)

    if weight is None:
        w = jnp.ones((C,), jnp.float32)
    else:
        w = jnp.asarray(weight, jnp.float32)
    # TODO(synk): the PyTorch module also builds a host-side `class_wise_dice`
    # list via .item(); it is bookkeeping only and not part of the returned loss.
    return jnp.sum(dice * w) / n_classes


def _reference_dice_loss(inputs, target, n_classes, weight=None, softmax=False):
    # Pure-JAX reference mirroring the PyTorch module, for validation.
    x = jnp.asarray(inputs, jnp.float32)
    if softmax:
        x = jax.nn.softmax(x, axis=1)
    onehot = (target[:, None, :, :] ==
              jnp.arange(n_classes)[None, :, None, None]).astype(jnp.float32)
    smooth = 1e-5
    if weight is None:
        weight = [1.0] * n_classes
    loss = 0.0
    for i in range(n_classes):
        s = x[:, i]
        t = onehot[:, i]
        intersect = jnp.sum(s * t)
        y_sum = jnp.sum(t * t)
        z_sum = jnp.sum(s * s)
        dice = 1.0 - (2.0 * intersect + smooth) / (z_sum + y_sum + smooth)
        loss = loss + dice * weight[i]
    return loss / n_classes


if __name__ == "__main__":
    key = jax.random.PRNGKey(0)
    k1, k2, k3, k4, k5, k6 = jax.random.split(key, 6)

    # Case 1: HW multiple of 128 -> sublane-packed path (f32, +/- softmax).
    N, C, H, W = 2, 4, 16, 16
    inputs = jax.random.normal(k1, (N, C, H, W), dtype=jnp.float32)
    target = jax.random.randint(k2, (N, H, W), 0, C, dtype=jnp.int32)

    out_plain = jax.block_until_ready(dice_loss(inputs, target, C, softmax=False))
    out_sm = jax.block_until_ready(dice_loss(inputs, target, C, softmax=True))
    ref_plain = _reference_dice_loss(inputs, target, C, softmax=False)
    ref_sm = _reference_dice_loss(inputs, target, C, softmax=True)
    np.testing.assert_allclose(np.asarray(out_plain), np.asarray(ref_plain),
                               rtol=1e-5, atol=1e-6)
    np.testing.assert_allclose(np.asarray(out_sm), np.asarray(ref_sm),
                               rtol=1e-4, atol=1e-5)

    # Case 2: HW not a multiple of 128 -> flat fallback + ragged lane mask,
    # with class weights and softmax.
    H2 = W2 = 20
    inputs2 = jax.random.normal(k3, (N, C, H2, W2), dtype=jnp.float32)
    target2 = jax.random.randint(k4, (N, H2, W2), 0, C, dtype=jnp.int32)
    wts = [0.5, 1.0, 2.0, 1.5]
    out2 = jax.block_until_ready(
        dice_loss(inputs2, target2, C, weight=wts, softmax=True))
    ref2 = _reference_dice_loss(inputs2, target2, C, weight=wts, softmax=True)
    np.testing.assert_allclose(np.asarray(out2), np.asarray(ref2),
                               rtol=1e-4, atol=1e-5)

    # Case 3: bf16 logits streamed natively (f32 accumulation in-kernel).
    inputs_bf16 = inputs.astype(jnp.bfloat16)
    out_bf16 = jax.block_until_ready(dice_loss(inputs_bf16, target, C, softmax=False))
    ref_bf16 = _reference_dice_loss(inputs_bf16.astype(jnp.float32), target, C,
                                    softmax=False)
    np.testing.assert_allclose(np.asarray(out_bf16), np.asarray(ref_bf16),
                               rtol=1e-2, atol=1e-3)

    # Case 4: N=1 with small row blocks -> exercises the ragged row mask and
    # the P=2 "parallel" super-block split (megacore occupancy path).
    N3, H3, W3 = 1, 56, 64           # HW = 3584 = 28 * 128
    inputs3 = jax.random.normal(k5, (N3, C, H3, W3), dtype=jnp.float32)
    target3 = jax.random.randint(k6, (N3, H3, W3), 0, C, dtype=jnp.int32)
    out3 = jax.block_until_ready(
        dice_loss(inputs3, target3, C, softmax=True, block_rows=8))
    ref3 = _reference_dice_loss(inputs3, target3, C, softmax=True)
    np.testing.assert_allclose(np.asarray(out3), np.asarray(ref3),
                               rtol=1e-4, atol=1e-5)

    print("KERNEL_OK")
</pallas_src>

<mosaic_0001>
module attributes {stable_mosaic.version = 11 : i64} {
  func.func @_dice_sums_packed_kernel(%arg0: i32, %arg1: i32, %arg2: i32, %arg3: memref<1x4x2x128xf32, #tpu.memory_space<vmem>>, %arg4: memref<1x2x128xi32, #tpu.memory_space<vmem>>, %arg5: memref<1x4x3xf32, #tpu.memory_space<vmem>>, %arg6: memref<4x128xf32, #tpu.memory_space<vmem>>, %arg7: memref<4x128xf32, #tpu.memory_space<vmem>>, %arg8: memref<4x128xf32, #tpu.memory_space<vmem>>) attributes {dimension_semantics = [#tpu.dimension_semantics<parallel>, #tpu.dimension_semantics<parallel>, #tpu.dimension_semantics<arbitrary>], iteration_bounds = array<i64: 2, 1, 1>, scalar_prefetch = 0 : i64, scratch_operands = 3 : i64, tpu.core_type = #tpu.core_type<tc>, window_params = [{transform_indices = @transform_0, window_bounds = array<i64: 1, 4, 2, 128>}, {transform_indices = @transform_1, window_bounds = array<i64: 1, 2, 128>}, {transform_indices = @transform_2, window_bounds = array<i64: 1, 4, 3>}]} {
    %c0_i32 = arith.constant 0 : i32
    %0 = arith.cmpi eq, %arg2, %c0_i32 : i32
    %1 = arith.extui %0 : i1 to i32
    %c0_i32_0 = arith.constant 0 : i32
    %2 = arith.cmpi ne, %1, %c0_i32_0 : i32
    scf.if %2 {
      %cst_42 = arith.constant 0.000000e+00 : f32
      %84 = vector.broadcast %cst_42 : f32 to vector<4x128xf32>
      %c0_43 = arith.constant 0 : index
      %c0_44 = arith.constant 0 : index
      %85 = vector.load %arg6[%c0_43, %c0_44] : memref<4x128xf32, #tpu.memory_space<vmem>>, vector<4x128xf32>
      tpu.vector_store %arg6[%c0_43, %c0_44], %84 {strides = array<i32>} : memref<4x128xf32, #tpu.memory_space<vmem>>, vector<4x128xf32>,
      %cst_45 = arith.constant 0.000000e+00 : f32
      %86 = vector.broadcast %cst_45 : f32 to vector<4x128xf32>
      %c0_46 = arith.constant 0 : index
      %c0_47 = arith.constant 0 : index
      %87 = vector.load %arg7[%c0_46, %c0_47] : memref<4x128xf32, #tpu.memory_space<vmem>>, vector<4x128xf32>
      tpu.vector_store %arg7[%c0_46, %c0_47], %86 {strides = array<i32>} : memref<4x128xf32, #tpu.memory_space<vmem>>, vector<4x128xf32>,
      %cst_48 = arith.constant 0.000000e+00 : f32
      %88 = vector.broadcast %cst_48 : f32 to vector<4x128xf32>
      %c0_49 = arith.constant 0 : index
      %c0_50 = arith.constant 0 : index
      %89 = vector.load %arg8[%c0_49, %c0_50] : memref<4x128xf32, #tpu.memory_space<vmem>>, vector<4x128xf32>
      tpu.vector_store %arg8[%c0_49, %c0_50], %88 {strides = array<i32>} : memref<4x128xf32, #tpu.memory_space<vmem>>, vector<4x128xf32>,
    } else {
    }
    %c0 = arith.constant 0 : index
    %c0_1 = arith.constant 0 : index
    %c0_2 = arith.constant 0 : index
    %3 = vector.load %arg4[%c0, %c0_1, %c0_2] : memref<1x2x128xi32, #tpu.memory_space<vmem>>, vector<1x2x128xi32>
    %4 = vector.shape_cast %3 : vector<1x2x128xi32> to vector<2x128xi32>
    %c0_3 = arith.constant 0 : index
    %c0_4 = arith.constant 0 : index
    %c0_5 = arith.constant 0 : index
    %c0_6 = arith.constant 0 : index
    %5 = vector.load %arg3[%c0_3, %c0_4, %c0_5, %c0_6] : memref<1x4x2x128xf32, #tpu.memory_space<vmem>>, vector<1x1x2x128xf32>
    %6 = vector.shape_cast %5 : vector<1x1x2x128xf32> to vector<2x128xf32>
    %c0_7 = arith.constant 0 : index
    %c1 = arith.constant 1 : index
    %c0_8 = arith.constant 0 : index
    %c0_9 = arith.constant 0 : index
    %7 = vector.load %arg3[%c0_7, %c1, %c0_8, %c0_9] : memref<1x4x2x128xf32, #tpu.memory_space<vmem>>, vector<1x1x2x128xf32>
    %8 = vector.shape_cast %7 : vector<1x1x2x128xf32> to vector<2x128xf32>
    %c0_10 = arith.constant 0 : index
    %c2 = arith.constant 2 : index
    %c0_11 = arith.constant 0 : index
    %c0_12 = arith.constant 0 : index
    %9 = vector.load %arg3[%c0_10, %c2, %c0_11, %c0_12] : memref<1x4x2x128xf32, #tpu.memory_space<vmem>>, vector<1x1x2x128xf32>
    %10 = vector.shape_cast %9 : vector<1x1x2x128xf32> to vector<2x128xf32>
    %c0_13 = arith.constant 0 : index
    %c3 = arith.constant 3 : index
    %c0_14 = arith.constant 0 : index
    %c0_15 = arith.constant 0 : index
    %11 = vector.load %arg3[%c0_13, %c3, %c0_14, %c0_15] : memref<1x4x2x128xf32, #tpu.memory_space<vmem>>, vector<1x1x2x128xf32>
    %12 = vector.shape_cast %11 : vector<1x1x2x128xf32> to vector<2x128xf32>
    %c0_i32_16 = arith.constant 0 : i32
    %13 = vector.broadcast %c0_i32_16 : i32 to vector<2x128xi32>
    %14 = arith.cmpi eq, %4, %13 : vector<2x128xi32>
    %15 = arith.extui %14 : vector<2x128xi1> to vector<2x128xi32>
    %16 = arith.sitofp %15 : vector<2x128xi32> to vector<2x128xf32>
    %17 = arith.mulf %6, %16 : vector<2x128xf32>
    %cst = arith.constant dense<0.000000e+00> : vector<128xf32>
    %18 = vector.multi_reduction <add>, %17, %cst [0] : vector<2x128xf32> to vector<128xf32>
    %19 = vector.shape_cast %18 : vector<128xf32> to vector<1x128xf32>
    %20 = arith.mulf %6, %6 : vector<2x128xf32>
    %cst_17 = arith.constant dense<0.000000e+00> : vector<128xf32>
    %21 = vector.multi_reduction <add>, %20, %cst_17 [0] : vector<2x128xf32> to vector<128xf32>
    %22 = vector.shape_cast %21 : vector<128xf32> to vector<1x128xf32>
    %23 = arith.extui %14 : vector<2x128xi1> to vector<2x128xi32>
    %24 = arith.sitofp %23 : vector<2x128xi32> to vector<2x128xf32>
    %cst_18 = arith.constant dense<0.000000e+00> : vector<128xf32>
    %25 = vector.multi_reduction <add>, %24, %cst_18 [0] : vector<2x128xf32> to vector<128xf32>
    %26 = vector.shape_cast %25 : vector<128xf32> to vector<1x128xf32>
    %c1_i32 = arith.constant 1 : i32
    %27 = vector.broadcast %c1_i32 : i32 to vector<2x128xi32>
    %28 = arith.cmpi eq, %4, %27 : vector<2x128xi32>
    %29 = arith.extui %28 : vector<2x128xi1> to vector<2x128xi32>
    %30 = arith.sitofp %29 : vector<2x128xi32> to vector<2x128xf32>
    %31 = arith.mulf %8, %30 : vector<2x128xf32>
    %cst_19 = arith.constant dense<0.000000e+00> : vector<128xf32>
    %32 = vector.multi_reduction <add>, %31, %cst_19 [0] : vector<2x128xf32> to vector<128xf32>
    %33 = vector.shape_cast %32 : vector<128xf32> to vector<1x128xf32>
    %34 = arith.mulf %8, %8 : vector<2x128xf32>
    %cst_20 = arith.constant dense<0.000000e+00> : vector<128xf32>
    %35 = vector.multi_reduction <add>, %34, %cst_20 [0] : vector<2x128xf32> to vector<128xf32>
    %36 = vector.shape_cast %35 : vector<128xf32> to vector<1x128xf32>
    %37 = arith.extui %28 : vector<2x128xi1> to vector<2x128xi32>
    %38 = arith.sitofp %37 : vector<2x128xi32> to vector<2x128xf32>
    %cst_21 = arith.constant dense<0.000000e+00> : vector<128xf32>
    %39 = vector.multi_reduction <add>, %38, %cst_21 [0] : vector<2x128xf32> to vector<128xf32>
    %40 = vector.shape_cast %39 : vector<128xf32> to vector<1x128xf32>
    %c2_i32 = arith.constant 2 : i32
    %41 = vector.broadcast %c2_i32 : i32 to vector<2x128xi32>
    %42 = arith.cmpi eq, %4, %41 : vector<2x128xi32>
    %43 = arith.extui %42 : vector<2x128xi1> to vector<2x128xi32>
    %44 = arith.sitofp %43 : vector<2x128xi32> to vector<2x128xf32>
    %45 = arith.mulf %10, %44 : vector<2x128xf32>
    %cst_22 = arith.constant dense<0.000000e+00> : vector<128xf32>
    %46 = vector.multi_reduction <add>, %45, %cst_22 [0] : vector<2x128xf32> to vector<128xf32>
    %47 = vector.shape_cast %46 : vector<128xf32> to vector<1x128xf32>
    %48 = arith.mulf %10, %10 : vector<2x128xf32>
    %cst_23 = arith.constant dense<0.000000e+00> : vector<128xf32>
    %49 = vector.multi_reduction <add>, %48, %cst_23 [0] : vector<2x128xf32> to vector<128xf32>
    %50 = vector.shape_cast %49 : vector<128xf32> to vector<1x128xf32>
    %51 = arith.extui %42 : vector<2x128xi1> to vector<2x128xi32>
    %52 = arith.sitofp %51 : vector<2x128xi32> to vector<2x128xf32>
    %cst_24 = arith.constant dense<0.000000e+00> : vector<128xf32>
    %53 = vector.multi_reduction <add>, %52, %cst_24 [0] : vector<2x128xf32> to vector<128xf32>
    %54 = vector.shape_cast %53 : vector<128xf32> to vector<1x128xf32>
    %c3_i32 = arith.constant 3 : i32
    %55 = vector.broadcast %c3_i32 : i32 to vector<2x128xi32>
    %56 = arith.cmpi eq, %4, %55 : vector<2x128xi32>
    %57 = arith.extui %56 : vector<2x128xi1> to vector<2x128xi32>
    %58 = arith.sitofp %57 : vector<2x128xi32> to vector<2x128xf32>
    %59 = arith.mulf %12, %58 : vector<2x128xf32>
    %cst_25 = arith.constant dense<0.000000e+00> : vector<128xf32>
    %60 = vector.multi_reduction <add>, %59, %cst_25 [0] : vector<2x128xf32> to vector<128xf32>
    %61 = vector.shape_cast %60 : vector<128xf32> to vector<1x128xf32>
    %62 = arith.mulf %12, %12 : vector<2x128xf32>
    %cst_26 = arith.constant dense<0.000000e+00> : vector<128xf32>
    %63 = vector.multi_reduction <add>, %62, %cst_26 [0] : vector<2x128xf32> to vector<128xf32>
    %64 = vector.shape_cast %63 : vector<128xf32> to vector<1x128xf32>
    %65 = arith.extui %56 : vector<2x128xi1> to vector<2x128xi32>
    %66 = arith.sitofp %65 : vector<2x128xi32> to vector<2x128xf32>
    %cst_27 = arith.constant dense<0.000000e+00> : vector<128xf32>
    %67 = vector.multi_reduction <add>, %66, %cst_27 [0] : vector<2x128xf32> to vector<128xf32>
    %68 = vector.shape_cast %67 : vector<128xf32> to vector<1x128xf32>
    %c0_28 = arith.constant 0 : index
    %c0_29 = arith.constant 0 : index
    %69 = vector.load %arg6[%c0_28, %c0_29] : memref<4x128xf32, #tpu.memory_space<vmem>>, vector<4x128xf32>
    %70 = tpu.concatenate %19, %33, %47, %61 in 0 : vector<1x128xf32>, vector<1x128xf32>, vector<1x128xf32>, vector<1x128xf32> -> vector<4x128xf32>
    %71 = arith.addf %69, %70 : vector<4x128xf32>
    %c0_30 = arith.constant 0 : index
    %c0_31 = arith.constant 0 : index
    %72 = vector.load %arg6[%c0_30, %c0_31] : memref<4x128xf32, #tpu.memory_space<vmem>>, vector<4x128xf32>
    tpu.vector_store %arg6[%c0_30, %c0_31], %71 {strides = array<i32>} : memref<4x128xf32, #tpu.memory_space<vmem>>, vector<4x128xf32>,
    %c0_32 = arith.constant 0 : index
    %c0_33 = arith.constant 0 : index
    %73 = vector.load %arg7[%c0_32, %c0_33] : memref<4x128xf32, #tpu.memory_space<vmem>>, vector<4x128xf32>
    %74 = tpu.concatenate %22, %36, %50, %64 in 0 : vector<1x128xf32>, vector<1x128xf32>, vector<1x128xf32>, vector<1x128xf32> -> vector<4x128xf32>
    %75 = arith.addf %73, %74 : vector<4x128xf32>
    %c0_34 = arith.constant 0 : index
    %c0_35 = arith.constant 0 : index
    %76 = vector.load %arg7[%c0_34, %c0_35] : memref<4x128xf32, #tpu.memory_space<vmem>>, vector<4x128xf32>
    tpu.vector_store %arg7[%c0_34, %c0_35], %75 {strides = array<i32>} : memref<4x128xf32, #tpu.memory_space<vmem>>, vector<4x128xf32>,
    %c0_36 = arith.constant 0 : index
    %c0_37 = arith.constant 0 : index
    %77 = vector.load %arg8[%c0_36, %c0_37] : memref<4x128xf32, #tpu.memory_space<vmem>>, vector<4x128xf32>
    %78 = tpu.concatenate %26, %40, %54, %68 in 0 : vector<1x128xf32>, vector<1x128xf32>, vector<1x128xf32>, vector<1x128xf32> -> vector<4x128xf32>
    %79 = arith.addf %77, %78 : vector<4x128xf32>
    %c0_38 = arith.constant 0 : index
    %c0_39 = arith.constant 0 : index
    %80 = vector.load %arg8[%c0_38, %c0_39] : memref<4x128xf32, #tpu.memory_space<vmem>>, vector<4x128xf32>
    tpu.vector_store %arg8[%c0_38, %c0_39], %79 {strides = array<i32>} : memref<4x128xf32, #tpu.memory_space<vmem>>, vector<4x128xf32>,
    %c0_i32_40 = arith.constant 0 : i32
    %81 = arith.cmpi eq, %arg2, %c0_i32_40 : i32
    %82 = arith.extui %81 : i1 to i32
    %c0_i32_41 = arith.constant 0 : i32
    %83 = arith.cmpi ne, %82, %c0_i32_41 : i32
    scf.if %83 {
      %c0_42 = arith.constant 0 : index
      %c0_43 = arith.constant 0 : index
      %84 = vector.load %arg6[%c0_42, %c0_43] : memref<4x128xf32, #tpu.memory_space<vmem>>, vector<4x128xf32>
      %cst_44 = arith.constant dense<0.000000e+00> : vector<4xf32>
      %85 = vector.multi_reduction <add>, %84, %cst_44 [1] : vector<4x128xf32> to vector<4xf32>
      %86 = vector.shape_cast %85 : vector<4xf32> to vector<4x1xf32>
      %c0_45 = arith.constant 0 : index
      %c0_46 = arith.constant 0 : index
      %87 = vector.load %arg7[%c0_45, %c0_46] : memref<4x128xf32, #tpu.memory_space<vmem>>, vector<4x128xf32>
      %cst_47 = arith.constant dense<0.000000e+00> : vector<4xf32>
      %88 = vector.multi_reduction <add>, %87, %cst_47 [1] : vector<4x128xf32> to vector<4xf32>
      %89 = vector.shape_cast %88 : vector<4xf32> to vector<4x1xf32>
      %c0_48 = arith.constant 0 : index
      %c0_49 = arith.constant 0 : index
      %90 = vector.load %arg8[%c0_48, %c0_49] : memref<4x128xf32, #tpu.memory_space<vmem>>, vector<4x128xf32>
      %cst_50 = arith.constant dense<0.000000e+00> : vector<4xf32>
      %91 = vector.multi_reduction <add>, %90, %cst_50 [1] : vector<4x128xf32> to vector<4xf32>
      %92 = vector.shape_cast %91 : vector<4xf32> to vector<4x1xf32>
      %93 = tpu.concatenate %86, %89, %92 in 1 : vector<4x1xf32>, vector<4x1xf32>, vector<4x1xf32> -> vector<4x3xf32>
      %c0_51 = arith.constant 0 : index
      %c0_52 = arith.constant 0 : index
      %c0_53 = arith.constant 0 : index
      %94 = vector.load %arg5[%c0_51, %c0_52, %c0_53] : memref<1x4x3xf32, #tpu.memory_space<vmem>>, vector<1x4x3xf32>
      %95 = vector.shape_cast %94 : vector<1x4x3xf32> to vector<4x3xf32>
      %96 = vector.shape_cast %93 : vector<4x3xf32> to vector<1x4x3xf32>
      tpu.vector_store %arg5[%c0_51, %c0_52, %c0_53], %96 {strides = array<i32>} : memref<1x4x3xf32, #tpu.memory_space<vmem>>, vector<1x4x3xf32>,
    } else {
    }
    return
  }
  func.func @transform_0(%arg0: i32, %arg1: i32, %arg2: i32) -> (i32, i32, i32, i32) {
    %c1_i32 = arith.constant 1 : i32
    %0 = arith.muli %arg1, %c1_i32 : i32
    %1 = arith.addi %0, %arg2 : i32
    %c0_i32 = arith.constant 0 : i32
    %c0_i32_0 = arith.constant 0 : i32
    %c0_i32_1 = arith.constant 0 : i32
    return %arg0, %c0_i32, %1, %c0_i32_0 : i32, i32, i32, i32
  }
  func.func @transform_1(%arg0: i32, %arg1: i32, %arg2: i32) -> (i32, i32, i32) {
    %c1_i32 = arith.constant 1 : i32
    %0 = arith.muli %arg1, %c1_i32 : i32
    %1 = arith.addi %0, %arg2 : i32
    %c0_i32 = arith.constant 0 : i32
    %c0_i32_0 = arith.constant 0 : i32
    return %arg0, %1, %c0_i32 : i32, i32, i32
  }
  func.func @transform_2(%arg0: i32, %arg1: i32, %arg2: i32) -> (i32, i32, i32) {
    %c1_i32 = arith.constant 1 : i32
    %0 = arith.muli %arg0, %c1_i32 : i32
    %1 = arith.addi %0, %arg1 : i32
    %c0_i32 = arith.constant 0 : i32
    %c0_i32_0 = arith.constant 0 : i32
    %c0_i32_1 = arith.constant 0 : i32
    return %1, %c0_i32, %c0_i32_0 : i32, i32, i32
  }
}

</mosaic_0001>

<bundles_post_ra>
// kernel: tpu_custom_call.1
= control target key start
LH: loop header
LB: loop body
LE: loop exit
PB: predicated region body
PF: predicated region fallthrough
CT: control target
= control target key end

     0   :  { %7 = vsyncpa [#allocation6], 0  ;;  %s932_s0 = inlined_call_operand.hbm [shape: f32[2,4,2,128], index: 0, kind: input, shape index: {}]   ;;  %s933_s1 = inlined_call_operand.hbm [shape: s32[2,2,128], index: 1, kind: input, shape index: {}]   ;;  %s934_s2 = inlined_call_operand.vmem [shape: f32[2,4,3], index: 2, kind: output, shape index: {}]  }
   0x1   :  { %9 = vsyncpa [#allocation6 + $0x1], 0 }
   0x2   :  { %10 = vsyncpa [#allocation8], 0 }
   0x3   :  { %12 = vsyncpa [#allocation8 + $0x1], 0  ;;  %s728_s9 = smov 0   ;;  %s730_s10 = smov 0  }
   0x4   :  { %s732_s11 = smov 0   ;;  %s734_s12 = smov 0  }
   0x5   :  { %s736_s13 = smov 0   ;;  %s738_s14 = smov 0  }
   0x6 LB: > { %s506_s15 = sadd.s32 4294967295, %s706_s14   ;;  %s37_s16 = sadd.s32 1, %s702_s13  ;;  %s706_s14 = sphi %s738_s14, %s18_s14   ;;  %s702_s13 = sphi %s736_s13, %s946_s13   ;;  %s698_s12 = sphi %s734_s12, %s945_s12   ;;  %s694_s11 = sphi %s732_s11, %s944_s11   ;;  %s690_s10 = sphi %s730_s10, %s943_s10   ;;  %s686_s9 = sphi %s728_s9, %s942_s9  }
   0x7   : > { %p39_p0 = scmp.ge.s32.totalorder %s37_s16, 2  ;;  %s48_s17 = sadd.s32 1, %s694_s11 }
   0x8   : > { %p55_p1 = scmp.ne.s32.totalorder %s694_s11, %s690_s10  ;;  %p56_p2 = scmp.eq.s32.totalorder %s706_s14, 0 }
   0x9   : > { %s948_s16 = smov (%p39_p0, %s37_s16), 0  ;;  %p61_p4 = scmp.ne.s32.totalorder %s690_s10, %s686_s9 }
   0xa   : > { %p764_p3 = por %p56_p2, %p55_p1  ;;  %s43_s19 = ssub.s32 %s702_s13, %s948_s16 }
   0xb   : > { %p62_p5 = scmp.eq.s32.totalorder %s506_s15, 0  ;;  %p46_p6 = scmp.eq.s32.totalorder %s43_s19, 0 }
   0xc   : > { %p540_p8 = scmp.lt.s32.totalorder %s706_s14, 2  ;;  %s780_s22 = sand.u32 1, %s694_s11  }
   0xd   : > { %p771_p7 = por %p62_p5, %p61_p4  ;;  %s528_s23 = sshll.u32 %s702_s13, 7 }
   0xe   : > { %s777_s21 = scalar_select %p46_p6, %s694_s11, %s48_s17  }
   0xf   : > { %s937_s20 = scalar_select %p771_p7, 1, 0 }
  0x10   : > { %s510_s24 = sshll.u32 %s780_s22, 3  ;;  %s787_s27 = scalar_lea.hbm %s932_s0, %s528_s23 }
  0x11   : > { %s147_s28 = scalar_lea.vmem [#allocation5], %s510_s24  ;;  %p791_p9 = pnand %p540_p8, %p764_p3 }
  0x12   : > { %s156_s29 = sshll.u32 %s147_s28, 4  ;;  %s144_s3 = scalar_lea.sflag [#allocation6], %s780_s22  ;;  %s795_s29 = int_to_ptr.vmem [resolvable:$true] %s156_s29 }
  0x13   : > { %s592_s4 = scalar_lea.hbm %s787_s27, 128  ;;  %p594_p11 = pneg %p791_p9 }
  0x14   : > { %p593_p10 = scmp.ne.s32.totalorder %s787_s27, %s592_s4  ;;  %s597_s7 = scalar_lea.hbm %s932_s0, 256 }
  0x15   : > { %p598_p0 = scmp.lt.u32.totalorder %s787_s27, %s932_s0  ;;  %p599_p1 = scmp.lt.u32.totalorder %s597_s7, %s592_s4 }
  0x16   : > { %p595_p12 = pnand %p594_p11, %p593_p10  ;;  %p601_p3 = scmp.lt.u32.totalorder %s592_s4, %s787_s27 }
  0x17   : > { %p600_p2 = por %p599_p1, %p598_p0 }
  0x18   : > { %p596_p13 = pneg %p595_p12 }
  0x19   : > { %p602_p4 = por %p601_p3, %p600_p2 }
  0x1b   : > { %p603_p5 = pnand %p602_p4, %p596_p13 }
  0x1d   : > { %606 = shalt.err (!%p603_p5)
}
  0x1e   : > { %s607_s15 = scalar_lea.vmem %s795_s29, 128  ;;  %s708_s17 = smov [#allocation5]  }
  0x1f   : > { %p608_p6 = scmp.ne.s32.totalorder %s795_s29, %s607_s15  ;;  %s612_s18 = sshll.u32 %s708_s17, 4  ;;  %s613_s18 = int_to_ptr.vmem [resolvable:$false] %s612_s18 }
  0x20   : > { %s614_s19 = scalar_lea.vmem %s613_s18, 256  ;;  %p615_p12 = scmp.lt.s32.totalorder %s795_s29, %s613_s18 }
  0x21   : > { %p610_p8 = pnand %p608_p6, %p594_p11  ;;  %p616_p0 = scmp.lt.s32.totalorder %s614_s19, %s607_s15 }
  0x23   : > { %p611_p10 = pneg %p610_p8  ;;  %p617_p1 = por %p616_p0, %p615_p12 }
  0x25   : > { %p618_p2 = pnand %p617_p1, %p611_p10 }
  0x27   : > { %621 = shalt.err (!%p618_p2)
}
  0x28   : > { %s709_s23 = smov 32   ;;  %s710_s24 = smov 2  }
  0x29   : > { %536 = dma.hbm_to_vmem [thread:$0]  (!%p791_p9), %s787_s27, 128, %s795_s29, %s144_s3, %s709_s23, %s709_s23, %s710_s24  }
  0x2a   : > { %p515_p13 = scmp.ge.s32.totalorder %s706_s14, 1  ;;  %p184_p3 = scmp.lt.s32.totalorder %s706_s14, 3 }
  0x2b   : > { %s513_s25 = sshll.u32 %s780_s22, 1  ;;  %s514_s28 = sshll.u32 %s702_s13, 5 }
  0x2c   : > { %p828_p4 = pnand %p515_p13, %p184_p3  ;;  %s170_s4 = scalar_lea.vmem [#allocation7], %s513_s25 }
  0x2d   : > { %s179_s5 = sshll.u32 %s170_s4, 4  ;;  %s836_s8 = scalar_lea.hbm %s933_s1, %s514_s28  ;;  %s180_s5 = int_to_ptr.vmem [resolvable:$true] %s179_s5 }
  0x2e   : > { %s939_s26 = scalar_select %p828_p4, 1, 0 }
  0x2f   : > { %s167_s27 = scalar_lea.sflag [#allocation8], %s780_s22  ;;  %s622_s29 = scalar_lea.hbm %s836_s8, 32 }
  0x30   : > { %p623_p5 = scmp.ne.s32.totalorder %s836_s8, %s622_s29  ;;  %s627_s15 = scalar_lea.hbm %s933_s1, 64 }
  0x31   : > { %p628_p10 = scmp.lt.u32.totalorder %s836_s8, %s933_s1  ;;  %p629_p12 = scmp.lt.u32.totalorder %s627_s15, %s622_s29 }
  0x32   : > { %p625_p6 = pnand %p623_p5, %p594_p11  ;;  %p631_p1 = scmp.lt.u32.totalorder %s622_s29, %s836_s8 }
  0x33   : > { %p630_p0 = por %p629_p12, %p628_p10 }
  0x34   : > { %p626_p8 = pneg %p625_p6 }
  0x35   : > { %p632_p2 = por %p631_p1, %p630_p0 }
  0x37   : > { %p633_p13 = pnand %p632_p2, %p626_p8 }
  0x39   : > { %636 = shalt.err (!%p633_p13)
}
  0x3a   : > { %s637_s22 = scalar_lea.vmem %s180_s5, 32  ;;  %s711_s19 = smov [#allocation7]  }
  0x3b   : > { %p638_p3 = scmp.ne.s32.totalorder %s180_s5, %s637_s22  ;;  %s642_s23 = sshll.u32 %s711_s19, 4  ;;  %s643_s23 = int_to_ptr.vmem [resolvable:$false] %s642_s23 }
  0x3c   : > { %s644_s24 = scalar_lea.vmem %s643_s23, 64  ;;  %p645_p7 = scmp.lt.s32.totalorder %s180_s5, %s643_s23 }
  0x3d   : > { %p640_p5 = pnand %p638_p3, %p594_p11  ;;  %p646_p4 = scmp.lt.s32.totalorder %s644_s24, %s637_s22 }
  0x3f   : > { %p641_p6 = pneg %p640_p5  ;;  %p647_p10 = por %p646_p4, %p645_p7 }
  0x41   : > { %p648_p12 = pnand %p647_p10, %p641_p6 }
  0x43   : > { %651 = shalt.err (!%p648_p12)
}
  0x44   : > { %539 = dma.hbm_to_vmem [thread:$0]  (!%p791_p9), %s836_s8, 32, %s180_s5, %s167_s27  }
  0x45   : > { %p940_p8 = scmp.ne.s32.totalorder %s939_s26, 0 }
  0x46   : > { %s190_s25 = sand.u32 (!%p940_p8), 1, %s690_s10   ;;  %p941_p11 = scmp.ne.s32.totalorder (!%p940_p8), %s937_s20, 0 }
  0x47   : > { %188 = sbr.rel (%p940_p8) target bundleno = 275 (0x113), region = 28  ;;  %s516_s28 = sshll.u32 (!%p940_p8), %s190_s25, 3 }
  0x48   : > { %s191_s4 = scalar_lea.sflag (!%p940_p8), [#allocation6], %s190_s25  ;;  %s194_s6 = scalar_lea.vmem (!%p940_p8), [#allocation5], %s516_s28 }
  0x4e   : > { %677 = dma.done.wait (%p941_p11), %s191_s4, 128  }
  0x4f   : > { %679 = vsyncadd (%p941_p11), %s191_s4, 4294967168  ;;  %s517_s7 = sshll.u32 %s190_s25, 1  ;;  %s200_s29 = scalar_lea.sflag [#allocation8], %s190_s25 }
  0x50   : > { %s203_s30 = scalar_lea.vmem [#allocation7], %s517_s7 }
  0x51   : > { %681 = dma.done.wait (%p941_p11), %s200_s29, 32  }
  0x52   : > { %683 = vsyncadd (%p941_p11), %s200_s29, 4294967264  ;;  %v712_v0 = vmov 0.0   ;;  %vm256_vm0 = vcmask 1041408   ;;  %v244_v1 = vld [vmem:[%s203_s30] sm:$0x3]  ;;  %vm358_vm5 = vcmask 1040384  }
  0x53   : > { %241 = vst [vmem:[#allocation2] sm:$0xf] %v712_v0  ;;  %242 = vst [vmem:[#allocation3] sm:$0xf] %v712_v0  ;;  %v245_v2 = vld [vmem:[%s194_s6] sm:$0x3] }
  0x54   : > { %243 = vst [vmem:[#allocation4] sm:$0xf] %v712_v0  ;;  %v519_v3 = vld [vmem:[%s194_s6 + $0x2] sm:$0x3]  ;;  %v520_v4 = vld [vmem:[%s194_s6 + $0x4] sm:$0x3]  ;;  %v264_v6 = vmul.f32 %v245_v2, %v245_v2 }
  0x55   : > { %v521_v5 = vld [vmem:[%s194_s6 + $0x6] sm:$0x3]  ;;  %vm252_vm1 = vcmp.eq.s32.totalorder %v244_v1, 0  ;;  %vm279_vm2 = vcmp.eq.s32.totalorder %v244_v1, 1  ;;  %v290_v7 = vmul.f32 %v519_v3, %v519_v3  ;;  %vm305_vm3 = vcmp.eq.s32.totalorder %v244_v1, 2  ;;  %p232_p7 = scmp.lt.s32.totalorder %s698_s12, 1 }
  0x56   : > { %v869_v8 = vsel %vm252_vm1, 1.0, %v712_v0  ;;  %v871_v9 = vsel %vm279_vm2, 1.0, %v712_v0  ;;  %vm331_vm4 = vcmp.eq.s32.totalorder %v244_v1, 3  ;;  %v875_v12 = vsel %vm305_vm3, 1.0, %v712_v0 }
  0x57   : > { %v255_v10 = vmul.f32 %v869_v8, %v245_v2  ;;  %v282_v11 = vmul.f32 %v871_v9, %v519_v3  ;;  %v877_v13 = vsel %vm331_vm4, 1.0, %v712_v0  ;;  %v308_v14 = vmul.f32 %v875_v12, %v520_v4  ;;  %s950_s12 = smov (!%p232_p7, %s698_s12), 1 }
  0x58   : > { %v334_v15 = vmul.f32 %v877_v13, %v521_v5  ;;  %v265_v16 = vsel %vm256_vm0, %v264_v6, 0.0  ;;  %v291_v17 = vsel %vm256_vm0, %v290_v7, 0.0  ;;  %v316_v32 = vmul.f32 %v520_v4, %v520_v4  ;;  %s518_s20 = sshll.u32 %s950_s12, 2 }
  0x59   : > { %v257_v18 = vsel %vm256_vm0, %v255_v10, 0.0  ;;  %v283_v19 = vsel %vm256_vm0, %v282_v11, 0.0  ;;  %v266_v20 = vrot.slane %v265_v16, 4  ;;  %v292_v21 = vrot.slane %v291_v17, 4  ;;  %s235_s8 = scalar_lea.vmem %s934_s2, %s518_s20 }
  0x5a   : > { %v258_v22 = vrot.slane %v257_v18, 4  ;;  %v284_v23 = vrot.slane %v283_v19, 4  ;;  %v309_v24 = vsel %vm256_vm0, %v308_v14, 0.0  ;;  %v335_v25 = vsel %vm256_vm0, %v334_v15, 0.0  ;;  %v357_v6 = vld [vmem:[#allocation2] sm:$0xf] }
  0x5b   : > { %v310_v26 = vrot.slane %v309_v24, 4  ;;  %v336_v27 = vrot.slane %v335_v25, 4  ;;  %v267_v28 = vadd.f32 %v266_v20, %v265_v16  ;;  %v293_v29 = vadd.f32 %v292_v21, %v291_v17 }
  0x5c   : > { %v259_v30 = vadd.f32 %v258_v22, %v257_v18  ;;  %v285_v31 = vadd.f32 %v284_v23, %v283_v19  ;;  %v342_v33 = vmul.f32 %v521_v5, %v521_v5  ;;  %vm361_vm6 = vcmask 1042432  }
  0x5d   : > { %v311_v34 = vadd.f32 %v310_v26, %v309_v24  ;;  %v337_v35 = vadd.f32 %v336_v27, %v335_v25  ;;  %v268_v36 = vrot.slane %v267_v28, 2  ;;  %v294_v37 = vrot.slane %v293_v29, 2 }
  0x5e   : > { %v260_v38 = vrot.slane %v259_v30, 2  ;;  %v286_v39 = vrot.slane %v285_v31, 2  ;;  %v317_v40 = vsel %vm256_vm0, %v316_v32, 0.0  ;;  %v343_v41 = vsel %vm256_vm0, %v342_v33, 0.0 }
  0x5f   : > { %v312_v42 = vrot.slane %v311_v34, 2  ;;  %v338_v43 = vrot.slane %v337_v35, 2  ;;  %v269_v44 = vadd.f32 %v268_v36, %v267_v28  ;;  %v295_v45 = vadd.f32 %v294_v37, %v293_v29 }
  0x60   : > { %v261_v46 = vadd.f32 %v260_v38, %v259_v30  ;;  %v287_v47 = vadd.f32 %v286_v39, %v285_v31  ;;  %v318_v48 = vrot.slane %v317_v40, 4  ;;  %v344_v49 = vrot.slane %v343_v41, 4 }
  0x61   : > { %v313_v50 = vadd.f32 %v312_v42, %v311_v34  ;;  %v339_v51 = vadd.f32 %v338_v43, %v337_v35  ;;  %v270_v52 = vrot.slane %v269_v44, 1  ;;  %v296_v53 = vrot.slane %v295_v45, 1 }
  0x62   : > { %v262_v54 = vrot.slane %v261_v46, 1  ;;  %v288_v55 = vrot.slane %v287_v47, 1  ;;  %v319_v56 = vadd.f32 %v318_v48, %v317_v40  ;;  %v345_v57 = vadd.f32 %v344_v49, %v343_v41 }
  0x63   : > { %v314_v58 = vrot.slane %v313_v50, 1  ;;  %v340_v59 = vrot.slane %v339_v51, 1  ;;  %v271_v60 = vadd.f32 %v270_v52, %v269_v44  ;;  %v297_v61 = vadd.f32 %v296_v53, %v295_v45 }
  0x64   : > { %v263_v62 = vadd.f32 %v262_v54, %v261_v46  ;;  %v289_v63 = vadd.f32 %v288_v55, %v287_v47  ;;  %v320_v0 = vrot.slane %v319_v56, 2  ;;  %v346_v1 = vrot.slane %v345_v57, 2 }
  0x65   : > { %v315_v2 = vadd.f32 %v314_v58, %v313_v50  ;;  %v341_v3 = vadd.f32 %v340_v59, %v339_v51  ;;  %v366_v4 = vsel %vm358_vm5, %v271_v60, %v297_v61  ;;  %v272_v5 = vsel %vm256_vm0, %v869_v8, 0.0  ;;  %v371_v50 = vld [vmem:[#allocation4] sm:$0xf] }
  0x66   : > { %v359_v7 = vsel %vm358_vm5, %v263_v62, %v289_v63  ;;  %v321_v10 = vadd.f32 %v320_v0, %v319_v56  ;;  %v347_v11 = vadd.f32 %v346_v1, %v345_v57  ;;  %v273_v14 = vrot.slane %v272_v5, 4 }
  0x67   : > { %v360_v15 = vsel %vm256_vm0, %v359_v7, %v315_v2  ;;  %v298_v16 = vsel %vm256_vm0, %v871_v9, 0.0  ;;  %v324_v17 = vsel %vm256_vm0, %v875_v12, 0.0  ;;  %v350_v18 = vsel %vm256_vm0, %v877_v13, 0.0  ;;  %v365_v9 = vld [vmem:[#allocation3] sm:$0xf] }
  0x68   : > { %v362_v19 = vsel %vm361_vm6, %v360_v15, %v341_v3  ;;  %v322_v8 = vrot.slane %v321_v10, 1  ;;  %v348_v20 = vrot.slane %v347_v11, 1  ;;  %v274_v21 = vadd.f32 %v273_v14, %v272_v5 }
  0x69   : > { %v363_v22 = vadd.f32 %v362_v19, %v357_v6  ;;  %v299_v23 = vrot.slane %v298_v16, 4  ;;  %v325_v24 = vrot.slane %v324_v17, 4  ;;  %v351_v25 = vrot.slane %v350_v18, 4 }
  0x6a   : > { %v323_v26 = vadd.f32 %v322_v8, %v321_v10  ;;  %v349_v27 = vadd.f32 %v348_v20, %v347_v11  ;;  %v275_v28 = vrot.slane %v274_v21, 2  ;;  %vm381_vm7 = vcmask 1043456  }
  0x6b   : > { %364 = vst [vmem:[#allocation2] sm:$0xf] %v363_v22  ;;  %v300_v29 = vadd.f32 %v299_v23, %v298_v16  ;;  %v326_v30 = vadd.f32 %v325_v24, %v324_v17  ;;  %v352_v12 = vadd.f32 %v351_v25, %v350_v18  ;;  %vm393_vm8 = vcmask 7168  }
  0x6c   : > { %v367_v31 = vsel %vm256_vm0, %v366_v4, %v323_v26  ;;  %v276_v13 = vadd.f32 %v275_v28, %v274_v21  ;;  %vm395_vm9 = vcmask 15360   ;;  %vm397_vm10 = vcmask 19456  }
  0x6d   : > { %v368_v32 = vsel %vm361_vm6, %v367_v31, %v349_v27  ;;  %v301_v33 = vrot.slane %v300_v29, 2  ;;  %v327_v34 = vrot.slane %v326_v30, 2  ;;  %v353_v35 = vrot.slane %v352_v12, 2 }
  0x6e   : > { %v369_v36 = vadd.f32 %v368_v32, %v365_v9  ;;  %v277_v37 = vrot.slane %v276_v13, 1 }
  0x6f   : > { %v302_v38 = vadd.f32 %v301_v33, %v300_v29  ;;  %v328_v39 = vadd.f32 %v327_v34, %v326_v30  ;;  %v354_v40 = vadd.f32 %v353_v35, %v352_v12 }
  0x70   : > { %370 = vst [vmem:[#allocation3] sm:$0xf] %v369_v36  ;;  %v278_v41 = vadd.f32 %v277_v37, %v276_v13 }
  0x71   : > { %v303_v42 = vrot.slane %v302_v38, 1  ;;  %v329_v43 = vrot.slane %v328_v39, 1  ;;  %v355_v44 = vrot.slane %v354_v40, 1 }
  0x72   : > { %v380_v45 = vld [vmem:[#allocation2] sm:$0xf] }
  0x73   : > { %v382_v46 = vsel %vm381_vm7, %v380_v45, 0.0  ;;  %v304_v47 = vadd.f32 %v303_v42, %v302_v38  ;;  %v330_v48 = vadd.f32 %v329_v43, %v328_v39  ;;  %v356_v49 = vadd.f32 %v355_v44, %v354_v40 }
  0x74   : > { %383 = vadd.xlane.f32.xlu0 %v382_v46 }
  0x75   : > { %v372_v51 = vsel %vm358_vm5, %v278_v41, %v304_v47 }
  0x76   : > { %v373_v52 = vsel %vm256_vm0, %v372_v51, %v330_v48 }
  0x77   : > { %v385_v53 = vld [vmem:[#allocation3] sm:$0xf]  ;;  %v374_v54 = vsel %vm361_vm6, %v373_v52, %v356_v49 }
  0x78   : > { %v386_v55 = vsel %vm381_vm7, %v385_v53, 0.0  ;;  %v375_v56 = vadd.f32 %v374_v54, %v371_v50 }
  0x79   : > { %387 = vadd.xlane.f32.xlu0 %v386_v55 }
  0x7a   : > { %376 = vst [vmem:[#allocation4] sm:$0xf] %v375_v56 }
  0x81   : > { %v389_v57 = vld [vmem:[#allocation4] sm:$0xf] }
  0x82   : > { %v390_v58 = vsel %vm381_vm7, %v389_v57, 0.0 }
  0x83   : > { %391 = vadd.xlane.f32.xlu1 %v390_v58 }
 0x101   : > { %v384_v59 = vpop.xlane.xlu0 %383 }
 0x106   : > { %v388_v60 = vpop.xlane.xlu0 %387 }
 0x107   : > { %v394_v61 = vsel %vm393_vm8, %v384_v59, %v388_v60 }
 0x110   : > { %v392_v62 = vpop.xlane.xlu1 %391 }
 0x111   : > { %v396_v63 = vsel %vm395_vm9, %v394_v61, %v392_v62 }
 0x112   : > { %398 = vst.msk [vmem:[%s235_s8] sm:$0xf] %vm397_vm10, %v396_v63 }
 0x113 PF: > { %s18_s14 = sadd.s32 1, %s706_s14   ;;  %s942_s9 = smov %s690_s10 }
 0x114   : > { %p15_p9 = scmp.ge.s32.totalorder %s18_s14, 4   ;;  %s943_s10 = smov %s694_s11 }
 0x115   : > { %s944_s11 = smov %s777_s21  ;;  %s945_s12 = smov %s702_s13 }
 0x116   : > { %s946_s13 = smov %s948_s16  ;;  %17 = sbr.rel (!%p15_p9) target bundleno = 6 (0x6), region = 92 }
 0x11d   :  { %421 = vsyncpa [#allocation6], 1 }
 0x11e   :  { %423 = vsyncpa [#allocation6 + $0x1], 1 }
 0x11f   :  { %424 = vsyncpa [#allocation8], 1 }
 0x120   :  { %426 = vsyncpa [#allocation8 + $0x1], 1 }

</bundles_post_ra>
